<compile_context>
chip_gen: v7x
topology: tpu7x:2x2x1
jax: 0.10.0
libtpu: 0.0.40
codegen_flags: <defaults>
</compile_context>

<pallas_src>
import functools

import jax
import jax.numpy as jnp
from jax import lax
from jax.experimental import pallas as pl
from jax.experimental.pallas import tpu as pltpu


_MAX_BLOCK_BYTES = 4 * 1024 * 1024        # per-block budget for the eSE kernels
_VMEM_LIMIT_BYTES = 32 * 1024 * 1024      # < v7x 64 MiB physical, raises v5e's 16 MiB default
_NEG_INF = -1e30                          # finite "masked logit" value (avoids inf-inf)


# ----------------------------- tile pickers ---------------------------------

def _pick_batch_tile(B):
    """Batch rows per grid step: full batch when small, else a multiple of 8."""
    if B <= 8:
        return B
    for tb in (32, 16, 8):
        if B % tb == 0:
            return tb
    return 8  # cdiv grid; Pallas clamps/drops the out-of-range tail rows


def _pick_hw_tile(HW, C, TB, itemsize):
    """Lane-dense H*W tile: full HW if within budget, else a 128-multiple
    divisor, else a 128-multiple clamp (wrapper uses cdiv grid + masking)."""
    cap = max(128, (_MAX_BLOCK_BYTES // max(1, TB * C * itemsize)) // 128 * 128)
    if HW <= cap:
        return HW                         # block dim == full array dim is legal
    t = cap
    while t >= 128:
        if HW % t == 0:
            return t
        t -= 128
    return cap                            # no nice divisor: stay within budget


def _pick_seq_tile(N, max_tile):
    """Row tile for the attention kernel (full N, a divisor multiple of 8, or
    a bounded multiple of 8 with a cdiv grid)."""
    if N <= max_tile:
        return N
    t = max_tile - max_tile % 8
    while t >= 8:
        if N % t == 0:
            return t
        t -= 8
    return max_tile - max_tile % 8


# -------------------- eSE "scale": avgpool + 1x1 conv + hsigmoid ------------

def _ese_scale_kernel(x_ref, w_ref, b_ref, o_ref, acc_ref, *,
                      inv_hw, hw, hw_tile, mask_tail):
    # x_ref: (TB, C, HW_TILE) native dtype; w_ref: (C, out_ch) f32;
    # b_ref: (1, out_ch) f32; o_ref: (TB, out_ch) f32; acc_ref: (TB, C) f32 VMEM.
    k = pl.program_id(1)

    @pl.when(k == 0)
    def _():
        acc_ref[...] = jnp.zeros_like(acc_ref)

    x = x_ref[...].astype(jnp.float32)
    if mask_tail:
        lane = lax.broadcasted_iota(jnp.int32, x.shape, 2) + k * hw_tile
        x = jnp.where(lane < hw, x, 0.0)
    acc_ref[...] += jnp.sum(x, axis=-1)

    @pl.when(k == pl.num_programs(1) - 1)
    def _():
        pooled = acc_ref[...] * inv_hw                                 # (TB, C)
        y = jnp.dot(pooled, w_ref[...],
                    preferred_element_type=jnp.float32) + b_ref[...]   # (TB, out_ch)
        # Hsigmoid: relu6(y + 3) / 6
        o_ref[...] = jnp.clip(y + 3.0, 0.0, 6.0) * (1.0 / 6.0)


def ese_scale(x, weight, bias):
    """hsigmoid(Conv1x1(AdaptiveAvgPool2d(1)(x))) -> (B, out_ch) float32."""
    B, C, H, W = x.shape
    out_ch = weight.shape[0]
    HW = H * W

    x3 = x.reshape(B, C, HW)                                 # lane axis = H*W
    w_t = weight.reshape(out_ch, C).T.astype(jnp.float32)    # (C, out_ch)
    b_row = bias.reshape(1, out_ch).astype(jnp.float32)      # (1, out_ch)

    TB = _pick_batch_tile(B)
    HW_TILE = _pick_hw_tile(HW, C, TB, x.dtype.itemsize)
    grid = (pl.cdiv(B, TB), pl.cdiv(HW, HW_TILE))

    kernel = functools.partial(
        _ese_scale_kernel, inv_hw=1.0 / float(HW), hw=HW, hw_tile=HW_TILE,
        mask_tail=(HW % HW_TILE != 0))

    return pl.pallas_call(
        kernel,
        out_shape=jax.ShapeDtypeStruct((B, out_ch), jnp.float32),
        grid_spec=pltpu.PrefetchScalarGridSpec(
            num_scalar_prefetch=0,
            grid=grid,
            in_specs=[
                pl.BlockSpec((TB, C, HW_TILE), lambda b, k: (b, 0, k)),
                pl.BlockSpec((C, out_ch), lambda b, k: (0, 0)),
                pl.BlockSpec((1, out_ch), lambda b, k: (0, 0)),
            ],
            out_specs=pl.BlockSpec((TB, out_ch), lambda b, k: (b, 0)),
            scratch_shapes=[pltpu.VMEM((TB, C), jnp.float32)],
        ),
        compiler_params=pltpu.CompilerParams(
            dimension_semantics=("parallel", "arbitrary"),
            vmem_limit_bytes=_VMEM_LIMIT_BYTES),
    )(x3, w_t, b_row)


# -------------------- eSE "excite": x * scale (broadcast over H*W) ----------

def _excite_kernel(x_ref, s_ref, o_ref):
    # x_ref: (TB, C, HW_TILE) native dtype, s_ref: (TB, C, 1) f32,
    # o_ref: (TB, C, HW_TILE) in x's dtype (no f32 HBM round-trip).
    o_ref[...] = (x_ref[...].astype(jnp.float32) * s_ref[...]).astype(o_ref.dtype)


def ese_excite(x, s):
    """The `input * x` of eSEModule: x * s broadcast over the spatial dims."""
    B, C, H, W = x.shape
    HW = H * W
    x3 = x.reshape(B, C, HW)
    s3 = s.reshape(B, C, 1).astype(jnp.float32)

    TB = _pick_batch_tile(B)
    HW_TILE = _pick_hw_tile(HW, C, TB, x.dtype.itemsize)
    grid = (pl.cdiv(B, TB), pl.cdiv(HW, HW_TILE))

    out = pl.pallas_call(
        _excite_kernel,
        out_shape=jax.ShapeDtypeStruct((B, C, HW), x.dtype),
        grid_spec=pltpu.PrefetchScalarGridSpec(
            num_scalar_prefetch=0,
            grid=grid,
            in_specs=[
                pl.BlockSpec((TB, C, HW_TILE), lambda b, k: (b, 0, k)),
                pl.BlockSpec((TB, C, 1), lambda b, k: (b, 0, 0)),
            ],
            out_specs=pl.BlockSpec((TB, C, HW_TILE), lambda b, k: (b, 0, k)),
        ),
        compiler_params=pltpu.CompilerParams(
            dimension_semantics=("parallel", "parallel"),
            vmem_limit_bytes=_VMEM_LIMIT_BYTES),
    )(x3, s3)
    return out.reshape(B, C, H, W)


# -------- non-local block: softmax(theta @ phi^T) @ phi, flash-style --------

def _attn_kernel(q_ref, kv_ref, o_ref, m_ref, l_ref, acc_ref, *,
                 np_total, kv_tile, mask_tail):
    # q_ref: (TQ, ch) native dtype; kv_ref: (TK, ch) — used as both K and V.
    # Scratch: m/l (TQ, 1) f32, acc (TQ, ch) f32. Online softmax over the KV axis.
    kv = pl.program_id(1)

    @pl.when(kv == 0)
    def _():
        m_ref[...] = jnp.full_like(m_ref, -jnp.inf)
        l_ref[...] = jnp.zeros_like(l_ref)
        acc_ref[...] = jnp.zeros_like(acc_ref)

    q = q_ref[...]
    k = kv_ref[...]
    logits = lax.dot_general(q, k, (((1,), (1,)), ((), ())),
                             preferred_element_type=jnp.float32)       # (TQ, TK)
    if mask_tail:
        col = lax.broadcasted_iota(jnp.int32, logits.shape, 1) + kv * kv_tile
        logits = jnp.where(col < np_total, logits, _NEG_INF)

    m_prev = m_ref[...]
    m_new = jnp.maximum(m_prev, jnp.max(logits, axis=-1, keepdims=True))
    alpha = jnp.exp(m_prev - m_new)
    p = jnp.exp(logits - m_new)
    l_ref[...] = alpha * l_ref[...] + jnp.sum(p, axis=-1, keepdims=True)
    acc_ref[...] = alpha * acc_ref[...] + jnp.dot(
        p.astype(k.dtype), k, preferred_element_type=jnp.float32)
    m_ref[...] = m_new

    @pl.when(kv == pl.num_programs(1) - 1)
    def _():
        # Deferred normalization on the (TQ, ch) output; EUP approx reciprocal.
        o_ref[...] = (acc_ref[...] *
                      pl.reciprocal(l_ref[...], approx=True)).astype(o_ref.dtype)


def nonlocal_attention(theta, phi, *, max_q_tile=256, max_kv_tile=256):
    """softmax(theta @ phi^T, axis=-1) @ phi with phi deduped as K and V."""
    Nt, ch = theta.shape
    Np = phi.shape[0]
    TQ = _pick_seq_tile(Nt, max_q_tile)
    TK = _pick_seq_tile(Np, max_kv_tile)

    kernel = functools.partial(
        _attn_kernel, np_total=Np, kv_tile=TK, mask_tail=(Np % TK != 0))

    cost = pl.CostEstimate(
        flops=4 * Nt * Np * ch,
        transcendentals=Nt * Np,
        bytes_accessed=(2 * Nt * ch + Np * ch) * theta.dtype.itemsize)

    return pl.pallas_call(
        kernel,
        out_shape=jax.ShapeDtypeStruct((Nt, ch), theta.dtype),
        grid_spec=pltpu.PrefetchScalarGridSpec(
            num_scalar_prefetch=0,
            grid=(pl.cdiv(Nt, TQ), pl.cdiv(Np, TK)),
            in_specs=[
                pl.BlockSpec((TQ, ch), lambda i, k: (i, 0)),   # theta tile (resident over kv)
                pl.BlockSpec((TK, ch), lambda i, k: (k, 0)),   # phi tile, reused as K and V
            ],
            out_specs=pl.BlockSpec((TQ, ch), lambda i, k: (i, 0)),
            scratch_shapes=[
                pltpu.VMEM((TQ, 1), jnp.float32),    # running max m
                pltpu.VMEM((TQ, 1), jnp.float32),    # running sum l
                pltpu.VMEM((TQ, ch), jnp.float32),   # output accumulator
            ],
        ),
        compiler_params=pltpu.CompilerParams(
            dimension_semantics=("parallel", "arbitrary"),
            vmem_limit_bytes=_VMEM_LIMIT_BYTES),
        cost_estimate=cost,
    )(theta, phi)


# -------------------- max pool (tiny op, wrapper-side) -----------------------

def maxpool_2x2_ceil(x):
    # TODO(synk): MaxPool2d(2, stride=2, ceil_mode=True) stays as lax.reduce_window;
    # fusing it into the excite kernel would save one HBM re-read of `e` but needs
    # lane-decimating in-kernel stores that are risky to lower on Mosaic.
    ph = (-x.shape[2]) % 2
    pw = (-x.shape[3]) % 2
    return lax.reduce_window(
        x, jnp.array(-jnp.inf, x.dtype), lax.max,
        window_dimensions=(1, 1, 2, 2),
        window_strides=(1, 1, 2, 2),
        padding=((0, 0), (0, 0), (0, ph), (0, pw)))


# -------------------- full CMSA2 forward -------------------------------------

def cmsa2_forward(x, ese_w, ese_b, ese2_w, ese2_b, ch, vf_h=10, vf_w=10):
    """Pallas implementation of CMSA2.forward(x, ch, vf_h, vf_w)."""
    out_ch = ese2_w.shape[0]

    # eSE(x) — theta / phi-source / feats-source are identical; compute once.
    s = ese_scale(x, ese_w, ese_b)                     # (B, C) f32
    e = ese_excite(x, s)                               # (B, C, H, W) in x.dtype

    p = maxpool_2x2_ceil(e)                            # (B, C, ceil(H/2), ceil(W/2))

    assert e.size % ch == 0 and p.size % ch == 0
    theta = e.reshape(-1, ch)                          # (Nt, ch)
    phi = p.reshape(-1, ch)                            # (Np, ch)

    feats = nonlocal_attention(theta, phi)             # (Nt, ch)
    assert feats.shape[0] % (vf_h * vf_w) == 0
    feats = feats.reshape(-1, ch, vf_h, vf_w)          # (B2, ch, vf_h, vf_w)

    out = ese_scale(feats, ese2_w, ese2_b)             # (B2, out_ch)  == eSEModule2
    return out.reshape(-1, out_ch, 1, 1).astype(x.dtype)


# -------------------- pure-JAX reference for the correctness check ----------

def _reference(x, ese_w, ese_b, ese2_w, ese2_b, ch, vf_h, vf_w):
    hi = jax.lax.Precision.HIGHEST

    def hsig(v):
        return jnp.clip(v + 3.0, 0.0, 6.0) / 6.0

    def ese_scale_ref(v, w, b):
        pooled = jnp.mean(v.astype(jnp.float32), axis=(2, 3))
        return hsig(jnp.dot(pooled, w.reshape(w.shape[0], -1).T.astype(jnp.float32),
                            precision=hi) + b.astype(jnp.float32))

    s = ese_scale_ref(x, ese_w, ese_b)
    e = x * s[:, :, None, None]
    p = maxpool_2x2_ceil(e)
    theta = e.reshape(1, -1, ch)
    phi = p.reshape(1, -1, ch)
    attn = jax.nn.softmax(
        jnp.einsum("bnc,bmc->bnm", theta, phi, precision=hi), axis=-1)
    feats = jnp.einsum("bnm,bmc->bnc", attn, phi, precision=hi)
    feats = feats.reshape(-1, ch, vf_h, vf_w)
    out = ese_scale_ref(feats, ese2_w, ese2_b)
    return out.reshape(-1, ese2_w.shape[0], 1, 1)


if __name__ == "__main__":
    key = jax.random.PRNGKey(0)
    k_x, k_w1, k_b1, k_w2, k_b2 = jax.random.split(key, 5)

    # Shapes consistent with the module's reshape constraints:
    #   (B*C*H*W) % ch == 0 and (B*C*H*W/ch) % (vf_h*vf_w) == 0, ch == C.
    B, C, H, W = 2, 8, 32, 32    # input feature map (NCHW)
    out_ch = 4                   # eSEModule2 output channels
    ch = C                       # the `ch` argument of CMSA2.forward
    vf_h = vf_w = 8              # spatial size of the reshaped feats

    x = jax.random.normal(k_x, (B, C, H, W), dtype=jnp.float32)
    # Conv2d(C, C, 1) and Conv2d(C, out_ch, 1) parameters.
    ese_w = jax.random.normal(k_w1, (C, C, 1, 1), dtype=jnp.float32) * 0.3
    ese_b = jax.random.normal(k_b1, (C,), dtype=jnp.float32) * 0.1
    ese2_w = jax.random.normal(k_w2, (out_ch, C, 1, 1), dtype=jnp.float32) * 0.3
    ese2_b = jax.random.normal(k_b2, (out_ch,), dtype=jnp.float32) * 0.1

    out = cmsa2_forward(x, ese_w, ese_b, ese2_w, ese2_b,
                        ch=ch, vf_h=vf_h, vf_w=vf_w)
    out = jax.block_until_ready(out)

    ref = _reference(x, ese_w, ese_b, ese2_w, ese2_b, ch, vf_h, vf_w)
    assert out.shape == ref.shape, (out.shape, ref.shape)
    max_err = float(jnp.max(jnp.abs(out.astype(jnp.float32) - ref)))
    assert max_err < 2e-3, max_err

    print("KERNEL_OK")
</pallas_src>

<mosaic_0001>
module attributes {stable_mosaic.version = 11 : i64} {
  func.func @_ese_scale_kernel(%arg0: i32, %arg1: i32, %arg2: memref<2x8x1024xf32, #tpu.memory_space<vmem>>, %arg3: memref<8x8xf32, #tpu.memory_space<vmem>>, %arg4: memref<1x8xf32, #tpu.memory_space<vmem>>, %arg5: memref<2x8xf32, #tpu.memory_space<vmem>>, %arg6: memref<2x8xf32, #tpu.memory_space<vmem>>) attributes {dimension_semantics = [#tpu.dimension_semantics<parallel>, #tpu.dimension_semantics<arbitrary>], iteration_bounds = array<i64: 1, 1>, scalar_prefetch = 0 : i64, scratch_operands = 1 : i64, tpu.core_type = #tpu.core_type<tc>, window_params = [{transform_indices = @transform_0, window_bounds = array<i64: 2, 8, 1024>}, {pipeline_mode = #tpu.pipeline_mode<synchronous>, transform_indices = @transform_1, window_bounds = array<i64: 8, 8>}, {pipeline_mode = #tpu.pipeline_mode<synchronous>, transform_indices = @transform_2, window_bounds = array<i64: 1, 8>}, {transform_indices = @transform_3, window_bounds = array<i64: 2, 8>}]} {
    %c0_i32 = arith.constant 0 : i32
    %0 = arith.cmpi eq, %arg1, %c0_i32 : i32
    %1 = arith.extui %0 : i1 to i32
    %c0_i32_0 = arith.constant 0 : i32
    %2 = arith.cmpi ne, %1, %c0_i32_0 : i32
    scf.if %2 {
      %cst_9 = arith.constant 0.000000e+00 : f32
      %11 = vector.broadcast %cst_9 : f32 to vector<2x8xf32>
      %c0_10 = arith.constant 0 : index
      %c0_11 = arith.constant 0 : index
      %12 = vector.load %arg6[%c0_10, %c0_11] : memref<2x8xf32, #tpu.memory_space<vmem>>, vector<2x8xf32>
      tpu.vector_store %arg6[%c0_10, %c0_11], %11 {strides = array<i32>} : memref<2x8xf32, #tpu.memory_space<vmem>>, vector<2x8xf32>,
    } else {
    }
    %c0 = arith.constant 0 : index
    %c0_1 = arith.constant 0 : index
    %c0_2 = arith.constant 0 : index
    %3 = vector.load %arg2[%c0, %c0_1, %c0_2] : memref<2x8x1024xf32, #tpu.memory_space<vmem>>, vector<2x8x1024xf32>
    %c0_3 = arith.constant 0 : index
    %c0_4 = arith.constant 0 : index
    %4 = vector.load %arg6[%c0_3, %c0_4] : memref<2x8xf32, #tpu.memory_space<vmem>>, vector<2x8xf32>
    %cst = arith.constant dense<0.000000e+00> : vector<2x8xf32>
    %5 = vector.multi_reduction <add>, %3, %cst [2] : vector<2x8x1024xf32> to vector<2x8xf32>
    %6 = arith.addf %4, %5 : vector<2x8xf32>
    %c0_5 = arith.constant 0 : index
    %c0_6 = arith.constant 0 : index
    %7 = vector.load %arg6[%c0_5, %c0_6] : memref<2x8xf32, #tpu.memory_space<vmem>>, vector<2x8xf32>
    tpu.vector_store %arg6[%c0_5, %c0_6], %6 {strides = array<i32>} : memref<2x8xf32, #tpu.memory_space<vmem>>, vector<2x8xf32>,
    %c0_i32_7 = arith.constant 0 : i32
    %8 = arith.cmpi eq, %arg1, %c0_i32_7 : i32
    %9 = arith.extui %8 : i1 to i32
    %c0_i32_8 = arith.constant 0 : i32
    %10 = arith.cmpi ne, %9, %c0_i32_8 : i32
    scf.if %10 {
      %c0_9 = arith.constant 0 : index
      %c0_10 = arith.constant 0 : index
      %11 = vector.load %arg6[%c0_9, %c0_10] : memref<2x8xf32, #tpu.memory_space<vmem>>, vector<2x8xf32>
      %cst_11 = arith.constant 9.765625E-4 : f32
      %12 = vector.broadcast %cst_11 : f32 to vector<2x8xf32>
      %13 = arith.mulf %11, %12 : vector<2x8xf32>
      %c0_12 = arith.constant 0 : index
      %c0_13 = arith.constant 0 : index
      %14 = vector.load %arg3[%c0_12, %c0_13] : memref<8x8xf32, #tpu.memory_space<vmem>>, vector<8x8xf32>
      %cst_14 = arith.constant dense<0.000000e+00> : vector<2x8xf32>
      %15 = tpu.matmul %13, %14, %cst_14 {dimension_numbers = #tpu.dot_dimension_numbers<[1], [0], [0], [1], [0, 0, 1, 1], [], []>} : vector<2x8xf32>, vector<8x8xf32>, vector<2x8xf32> -> vector<2x8xf32>
      %c0_15 = arith.constant 0 : index
      %c0_16 = arith.constant 0 : index
      %16 = vector.load %arg4[%c0_15, %c0_16] : memref<1x8xf32, #tpu.memory_space<vmem>>, vector<1x8xf32>
      %17 = vector.broadcast %16 : vector<1x8xf32> to vector<2x8xf32>
      %18 = arith.addf %15, %17 : vector<2x8xf32>
      %cst_17 = arith.constant 3.000000e+00 : f32
      %19 = vector.broadcast %cst_17 : f32 to vector<2x8xf32>
      %20 = arith.addf %18, %19 : vector<2x8xf32>
      %cst_18 = arith.constant 0.000000e+00 : f32
      %cst_19 = arith.constant 6.000000e+00 : f32
      %21 = vector.broadcast %cst_18 : f32 to vector<2x8xf32>
      %22 = arith.maximumf %21, %20 : vector<2x8xf32>
      %23 = vector.broadcast %cst_19 : f32 to vector<2x8xf32>
      %24 = arith.minimumf %23, %22 : vector<2x8xf32>
      %cst_20 = arith.constant 0.166666672 : f32
      %25 = vector.broadcast %cst_20 : f32 to vector<2x8xf32>
      %26 = arith.mulf %24, %25 : vector<2x8xf32>
      %c0_21 = arith.constant 0 : index
      %c0_22 = arith.constant 0 : index
      %27 = vector.load %arg5[%c0_21, %c0_22] : memref<2x8xf32, #tpu.memory_space<vmem>>, vector<2x8xf32>
      tpu.vector_store %arg5[%c0_21, %c0_22], %26 {strides = array<i32>} : memref<2x8xf32, #tpu.memory_space<vmem>>, vector<2x8xf32>,
    } else {
    }
    return
  }
  func.func @transform_0(%arg0: i32, %arg1: i32) -> (i32, i32, i32) {
    %c0_i32 = arith.constant 0 : i32
    %c0_i32_0 = arith.constant 0 : i32
    return %arg0, %c0_i32, %arg1 : i32, i32, i32
  }
  func.func @transform_1(%arg0: i32, %arg1: i32) -> (i32, i32) {
    %c0_i32 = arith.constant 0 : i32
    %c0_i32_0 = arith.constant 0 : i32
    %c0_i32_1 = arith.constant 0 : i32
    return %c0_i32, %c0_i32_0 : i32, i32
  }
  func.func @transform_2(%arg0: i32, %arg1: i32) -> (i32, i32) {
    %c0_i32 = arith.constant 0 : i32
    %c0_i32_0 = arith.constant 0 : i32
    %c0_i32_1 = arith.constant 0 : i32
    return %c0_i32, %c0_i32_0 : i32, i32
  }
  func.func @transform_3(%arg0: i32, %arg1: i32) -> (i32, i32) {
    %c0_i32 = arith.constant 0 : i32
    %c0_i32_0 = arith.constant 0 : i32
    return %arg0, %c0_i32 : i32, i32
  }
}

</mosaic_0001>

<bundles_post_ra>
// kernel: tpu_custom_call.1
= control target key start
LH: loop header
LB: loop body
LE: loop exit
PB: predicated region body
PF: predicated region fallthrough
CT: control target
= control target key end

     0   :  { %8 = vsyncpa [#allocation4], 0  ;;  %s365_s0 = inlined_call_operand.hbm [shape: f32[2,8,1024], index: 0, kind: input, shape index: {}]   ;;  %s366_s1 = inlined_call_operand.hbm [shape: f32[8,8], index: 1, kind: input, shape index: {}]   ;;  %s367_s2 = inlined_call_operand.vmem [shape: f32[1,8], index: 2, kind: input, shape index: {}]   ;;  %s368_s3 = inlined_call_operand.hbm [shape: f32[2,8], index: 3, kind: output, shape index: {}]  }
   0x1   :  { %9 = vsyncpa [#allocation7], 0 }
   0x2   :  { %10 = vsyncpa [#allocation5], 0  ;;  %s296_s12 = smov [#allocation3]   ;;  %s224_s16 = scalar_lea.hbm %s365_s0, 2048 }
   0x3   :  { %s16_s13 = sshll.u32 %s296_s12, 4  ;;  %p225_p0 = scmp.ne.s32.totalorder %s365_s0, %s224_s16  ;;  %s17_s13 = int_to_ptr.vmem [resolvable:$true] %s16_s13 }
   0x4   :  { %p228_p1 = scmp.lt.u32.totalorder %s224_s16, %s365_s0 }
   0x6   :  { %p230_p2 = pnand %p228_p1, %p225_p0 }
   0x8   :  { %233 = shalt.err (!%p230_p2)
}
   0x9   :  { %s234_s21 = scalar_lea.vmem %s17_s13, 2048  ;;  %p239_p4 = scmp.lt.s32.totalorder %s17_s13, %s17_s13 }
   0xa   :  { %p235_p3 = scmp.ne.s32.totalorder %s17_s13, %s234_s21  ;;  %p240_p5 = scmp.lt.s32.totalorder %s234_s21, %s234_s21 }
   0xc   :  { %p241_p6 = por %p240_p5, %p239_p4 }
   0xe   :  { %p242_p7 = pnand %p241_p6, %p235_p3 }
  0x10   :  { %245 = shalt.err (!%p242_p7)
}
  0x11   :  { %s297_s22 = smov 1024   ;;  %s298_s23 = smov 64  }
  0x12   :  { %22 = dma.hbm_to_vmem [thread:$0]  %s365_s0, 2048, %s17_s13, [#allocation4], %s297_s22, %s297_s22, %s298_s23  }
  0x13   :  { %s299_s26 = smov [#allocation6]   ;;  %s246_s30 = scalar_lea.hbm %s366_s1, 128 }
  0x14   :  { %s29_s27 = sshll.u32 %s299_s26, 4  ;;  %p247_p8 = scmp.ne.s32.totalorder %s366_s1, %s246_s30  ;;  %s30_s27 = int_to_ptr.vmem [resolvable:$true] %s29_s27 }
  0x15   :  { %p250_p9 = scmp.lt.u32.totalorder %s246_s30, %s366_s1 }
  0x17   :  { %p252_p10 = pnand %p250_p9, %p247_p8 }
  0x19   :  { %255 = shalt.err (!%p252_p10)
}
  0x1a   :  { %s256_s8 = scalar_lea.vmem %s30_s27, 128  ;;  %p261_p12 = scmp.lt.s32.totalorder %s30_s27, %s30_s27 }
  0x1b   :  { %p257_p11 = scmp.ne.s32.totalorder %s30_s27, %s256_s8  ;;  %p262_p13 = scmp.lt.s32.totalorder %s256_s8, %s256_s8 }
  0x1d   :  { %p263_p0 = por %p262_p13, %p261_p12 }
  0x1f   :  { %p264_p1 = pnand %p263_p0, %p257_p11 }
  0x21   :  { %267 = shalt.err (!%p264_p1)
}
  0x22   :  { %32 = dma.hbm_to_vmem [thread:$0]  %s366_s1, 128, %s30_s27, [#allocation7]  }
  0x23   :  { %290 = dma.done.wait [#allocation4], 2048  }
  0x24   :  { %291 = vsyncadd [#allocation4], 4294965248 }
  0x25   :  { %292 = dma.done.wait [#allocation7], 128  }
  0x26   :  { %293 = vsyncadd [#allocation7], 4294967168  ;;  %v47_v0 = vld [vmem:[#allocation3] sm:$0xff]  ;;  %v48_v1 = vld [vmem:[#allocation3 + $0x8] sm:$0xff]  ;;  %vm45_vm0 = vcmask 58368   ;;  %v300_v30 = vmov 0.0   ;;  %v84_v32 = vlaneseq }
  0x27   :  { %v49_v2 = vld [vmem:[#allocation3 + $0x10] sm:$0xff]  ;;  %v64_v3 = vadd.f32 %v48_v1, %v47_v0  ;;  %v50_v4 = vld [vmem:[#allocation3 + $0x18] sm:$0xff]  ;;  %v55_v5 = vld [vmem:[#allocation3 + $0x40] sm:$0xff]  ;;  %46 = vst.msk [vmem:[#allocation2] sm:$0x3] %vm45_vm0, %v300_v30  ;;  %212 = vmatprep.subr.mxu0 %v300_v30  ;;  %vm301_vm1 = vmmov 0  }
  0x28   :  { %v56_v7 = vld [vmem:[#allocation3 + $0x48] sm:$0xff]  ;;  %v57_v8 = vld [vmem:[#allocation3 + $0x50] sm:$0xff]  ;;  %v51_v9 = vld [vmem:[#allocation3 + $0x20] sm:$0xff]  ;;  %214 = vmatprep.mubr.msk.f32.mxu0 %vm301_vm1, %v300_v30  ;;  %v85_v33 = vand.u32 127, %v84_v32  ;;  %v87_v34 = vshrl.u32 %v84_v32, 7  ;;  %vm94_vm2 = vcmask 1041409  }
  0x29   :  { %v65_v6 = vadd.f32 %v64_v3, %v49_v2  ;;  %v73_v10 = vadd.f32 %v56_v7, %v55_v5  ;;  %v58_v12 = vld [vmem:[#allocation3 + $0x58] sm:$0xff]  ;;  %v52_v13 = vld [vmem:[#allocation3 + $0x28] sm:$0xff]  ;;  %v59_v16 = vld [vmem:[#allocation3 + $0x60] sm:$0xff]  ;;  %vm113_vm3 = vcmask 64512   ;;  %s302_s11 = smov [#allocation8]  }
  0x2a   :  { %v53_v17 = vld [vmem:[#allocation3 + $0x30] sm:$0xff]  ;;  %v60_v20 = vld [vmem:[#allocation3 + $0x68] sm:$0xff]  ;;  %v54_v21 = vld [vmem:[#allocation3 + $0x38] sm:$0xff]  ;;  %v88_v36 = vsub.s32 %v85_v33, %v87_v34  ;;  %s198_s12 = sshll.u32 %s302_s11, 4  ;;  %s199_s12 = int_to_ptr.vmem [resolvable:$true] %s198_s12 }
  0x2b   :  { %v66_v11 = vadd.f32 %v65_v6, %v50_v4  ;;  %v74_v14 = vadd.f32 %v73_v10, %v57_v8  ;;  %v61_v24 = vld [vmem:[#allocation3 + $0x70] sm:$0xff]  ;;  %v62_v27 = vld [vmem:[#allocation3 + $0x78] sm:$0xff]  ;;  %v105_v31 = vld [vmem:[#allocation6] sm:$0xff]  ;;  %s268_s13 = scalar_lea.vmem %s199_s12, 32  ;;  %p273_p3 = scmp.lt.s32.totalorder %s199_s12, %s199_s12 }
  0x2c   :  { %213 = vmatpush3.msra.mxu0 %v105_v31  ;;  %v208_v45 = vld [vmem:[%s367_s2] ss:$0 sm:$0xff]  ;;  %p269_p2 = scmp.ne.s32.totalorder %s199_s12, %s268_s13  ;;  %p274_p4 = scmp.lt.s32.totalorder %s268_s13, %s268_s13 }
  0x2d   :  { %v67_v15 = vadd.f32 %v66_v11, %v51_v9  ;;  %v75_v18 = vadd.f32 %v74_v14, %v58_v12 }
  0x2e   :  { %v63_v40 = vld [vmem:[#allocation2] sm:$0x3]  ;;  %p275_p5 = por %p274_p4, %p273_p3 }
  0x2f   :  { %v68_v19 = vadd.f32 %v67_v15, %v52_v13  ;;  %v76_v22 = vadd.f32 %v75_v18, %v59_v16 }
  0x30   :  { %p276_p6 = pnand %p275_p5, %p269_p2 }
  0x31   :  { %v69_v23 = vadd.f32 %v68_v19, %v53_v17  ;;  %v77_v25 = vadd.f32 %v76_v22, %v60_v20 }
  0x33   :  { %v70_v26 = vadd.f32 %v69_v23, %v54_v21  ;;  %v78_v28 = vadd.f32 %v77_v25, %v61_v24 }
  0x35   :  { %71 = vadd.xlane.f32.xlu0 %v70_v26  ;;  %v79_v29 = vadd.f32 %v78_v28, %v62_v27 }
  0x39   :  { %80 = vadd.xlane.f32.xlu0 %v79_v29 }
  0xc2   :  { %v72_v35 = vpop.xlane.xlu0 %71 }
  0xc3   :  { %v89_v38 = vrot.slane %v72_v35, %v88_v36 }
  0xc6   :  { %v81_v37 = vpop.xlane.xlu0 %80 }
  0xc7   :  { %v93_v39 = vrot.slane %v81_v37, %v88_v36 }
  0xc9   :  { %v95_v41 = vsel %vm94_vm2, %v93_v39, %v89_v38 }
  0xca   :  { %v97_v42 = vadd.f32 %v95_v41, %v63_v40 }
  0xcc   :  { %99 = vst.msk [vmem:[#allocation2] sm:$0x3] %vm45_vm0, %v97_v42 }
  0xd3   :  { %v103_v43 = vld [vmem:[#allocation2] sm:$0x3] }
  0xd4   :  { %v104_v44 = vmul.f32 0.0009765625, %v103_v43 }
  0xd6   :  { %215 = vmatmul.mubr.msk.f32.vlgmr.msra.gmra.mrb[0].mxu0 %vm113_vm3, %v104_v44 }
 0x1a9   :  { %v183_v46 = vpop.f32.mrb[0].mxu0 }
 0x1aa   :  { %v184_v47 = vadd.f32 %v208_v45, %v183_v46  ;;  %v216_v48 = vpop.f32.mrb[1].mxu0 }
 0x1ac   :  { %v187_v49 = vadd.f32 3.0, %v184_v47 }
 0x1ae   :  { %v188_v50 = vmax.f32 %v187_v49, 0.0 }
 0x1b0   :  { %v189_v51 = vmin.f32 %v188_v50, 6.0 }
 0x1b2   :  { %v190_v52 = vmul.f32 0.16666667, %v189_v51 }
 0x1b4   :  { %191 = vst.msk [vmem:[#allocation8] sm:$0x3] %vm45_vm0, %v190_v52 }
 0x1b5   :  { %279 = shalt.err (!%p276_p6)
}
 0x1b6   :  { %s280_s15 = scalar_lea.hbm %s368_s3, 32 }
 0x1b7   :  { %p281_p7 = scmp.ne.s32.totalorder %s368_s3, %s280_s15  ;;  %p284_p8 = scmp.lt.u32.totalorder %s280_s15, %s368_s3 }
 0x1b9   :  { %p286_p9 = pnand %p284_p8, %p281_p7 }
 0x1bb   :  { %289 = shalt.err (!%p286_p9)
}
 0x1bc   :  { %201 = dma.vmem_to_hbm [thread:$0]  %s199_s12, 32, %s368_s3, [#allocation5]  }
 0x1bd   :  { %294 = dma.done.wait [#allocation5], 32  }
 0x1be   :  { %295 = vsyncadd [#allocation5], 4294967264 }
 0x1bf   :  { %205 = vsyncpa [#allocation4], 1 }
 0x1c0   :  { %206 = vsyncpa [#allocation7], 1 }
 0x1c1   :  { %207 = vsyncpa [#allocation5], 1 }

</bundles_post_ra>
